<compile_context>
chip_gen: v7x
topology: tpu7x:2x2x1
jax: 0.10.0
libtpu: 0.0.40
codegen_flags: <defaults>
</compile_context>

<pallas_src>
import functools

import jax
import jax.numpy as jnp
from jax import lax
from jax.experimental import pallas as pl
from jax.experimental.pallas import tpu as pltpu

_LANE = 128


def _minibatch_std_concat_kernel(x_ref, o_ref, *, chunk, unroll):
    # x_ref: (N, C, T) ; o_ref: (N, C+1, T) ; T % chunk == 0, chunk % 128 == 0.
    N, C, T = x_ref.shape
    n_chunks = T // chunk
    inv_n = jnp.float32(1.0 / N)

    @pl.loop(0, n_chunks)
    def _(ci):
        off = pl.multiple_of(ci * chunk, _LANE)

        # Pass 1 (fused): copy pass-through channels in the original dtype and
        # accumulate the batch sum in f32 from the same VMEM load.
        def p1(n, s):
            xn = x_ref[n, :, pl.ds(off, chunk)]              # (C, chunk)
            o_ref[n, :C, pl.ds(off, chunk)] = xn
            return s + xn.astype(jnp.float32)

        s = lax.fori_loop(0, N, p1, jnp.zeros((C, chunk), jnp.float32),
                          unroll=unroll)
        mean = s * inv_n                                      # (C, chunk) f32

        # Pass 2: faithful two-pass (x - mean)^2 (matches the PyTorch
        # formulation; tile is already in VMEM so the re-read is cheap).
        def p2(n, ss):
            d = x_ref[n, :, pl.ds(off, chunk)].astype(jnp.float32) - mean
            return ss + d * d

        ss = lax.fori_loop(0, N, p2, jnp.zeros((C, chunk), jnp.float32),
                           unroll=unroll)
        std = jnp.sqrt(ss * inv_n + jnp.float32(1e-8))        # (C, chunk)

        # averaging == 'all': mean over channels -> (1, chunk); broadcast over
        # the batch into the extra channel as one contiguous store.
        std_all = jnp.mean(std, axis=0, keepdims=True)
        o_ref[:, C:, pl.ds(off, chunk)] = jnp.broadcast_to(
            std_all[None], (N, 1, chunk)).astype(o_ref.dtype)


def _vmem_capacity_bytes():
    try:
        return int(pltpu.get_tpu_info().vmem_capacity_bytes)
    except Exception:
        return 64 * 1024 * 1024  # conservative (v7x per-TC VMEM)


def _plan(hw, n, c, dtype):
    """Pick (tile, chunk, hw_padded, vmem_limit_bytes) for the 1-D HW grid."""
    cdiv = lambda a, b: -(-a // b)
    hw_p = cdiv(hw, _LANE) * _LANE                 # lane-dense (mult of 128)
    in_b = jnp.dtype(dtype).itemsize

    vmem_cap = _vmem_capacity_bytes()
    small_vmem = vmem_cap < 100 * 1024 * 1024      # v7x-like part (64 MiB/TC)
    if small_vmem:
        budget = 28 * 1024 * 1024
        vmem_limit = 48 * 1024 * 1024
    else:                                          # v5e / v6e: 128 MiB VMEM
        budget = 88 * 1024 * 1024
        vmem_limit = 100 * 1024 * 1024

    # Per-lane working set: double-buffered input + output tiles (auto
    # pipelining) plus a fixed allowance for the f32 chunk accumulators.
    bytes_per_lane = 2 * n * c * in_b + 2 * n * (c + 1) * in_b
    fixed = 4 * c * 512 * 4
    max_lanes = max(
        _LANE, ((budget - fixed) // max(bytes_per_lane, 1)) // _LANE * _LANE)
    tile_cap = min(hw_p, max_lanes)

    # v7x: guarantee >=2 grid steps so the "parallel" HW axis shards across
    # both TensorCores.
    if small_vmem and hw_p >= 2 * _LANE:
        tile_cap = min(tile_cap, max((hw_p // 2) // _LANE * _LANE, _LANE))

    grid_n = cdiv(hw_p, tile_cap)
    tile = cdiv(cdiv(hw_p, grid_n), _LANE) * _LANE   # balanced, mult of 128
    hw_padded = grid_n * tile

    # Compute chunk: multiple of 128, divides the tile, keeps the two
    # (C, chunk) f32 carries + per-n temp comfortably inside the vreg file.
    max_chunk_by_c = max(_LANE, (8192 // max(c, 1)) // _LANE * _LANE)
    chunk = _LANE
    for cand in (512, 384, 256, 128):
        if cand <= max_chunk_by_c and tile % cand == 0:
            chunk = cand
            break
    return tile, chunk, hw_padded, vmem_limit


def minibatch_std_concat(x):
    """averaging='all': (N, C, H, W) -> (N, C+1, H, W)."""
    N, C, H, W = x.shape
    HW = H * W
    x_flat = x.reshape(N, C, HW)

    tile, chunk, HWp, vmem_limit = _plan(HW, N, C, x.dtype)
    if HWp != HW:
        # Pad the flattened spatial axis; the reduction is purely per-lane so
        # padded lanes cannot contaminate real outputs (sliced off below).
        x_flat = jnp.pad(x_flat, ((0, 0), (0, 0), (0, HWp - HW)))
    grid = (HWp // tile,)

    itemsize = jnp.dtype(x.dtype).itemsize
    cost = pl.CostEstimate(
        flops=5 * N * C * HWp + 4 * C * HWp,
        transcendentals=C * HWp,                     # sqrt per (C, HW) element
        bytes_accessed=(N * C + N * (C + 1)) * HWp * itemsize,
    )

    kernel = functools.partial(
        _minibatch_std_concat_kernel,
        chunk=chunk,
        unroll=(N if N <= 8 else 4),
    )

    out_flat = pl.pallas_call(
        kernel,
        out_shape=jax.ShapeDtypeStruct((N, C + 1, HWp), x.dtype),
        grid=grid,
        in_specs=[pl.BlockSpec((N, C, tile), lambda i: (0, 0, i))],
        out_specs=pl.BlockSpec((N, C + 1, tile), lambda i: (0, 0, i)),
        compiler_params=pltpu.CompilerParams(
            dimension_semantics=("parallel",),
            vmem_limit_bytes=vmem_limit,
        ),
        cost_estimate=cost,
    )(x_flat)

    if HWp != HW:
        out_flat = out_flat[:, :, :HW]
    return out_flat.reshape(N, C + 1, H, W)


def _reference(x):
    x32 = x.astype(jnp.float32)
    mean_b = jnp.mean(x32, axis=0, keepdims=True)
    std = jnp.sqrt(jnp.mean((x32 - mean_b) ** 2, axis=0, keepdims=True) + 1e-8)
    std = jnp.mean(std, axis=1, keepdims=True)            # (1, 1, H, W)
    vals = jnp.broadcast_to(std, (x.shape[0], 1, x.shape[2], x.shape[3]))
    return jnp.concatenate([x32, vals], axis=1).astype(x.dtype)


if __name__ == "__main__":
    key = jax.random.PRNGKey(0)

    # Small shape matching the module's typical use.
    N, C, H, W = 2, 4, 16, 16
    x = jax.random.normal(key, (N, C, H, W), dtype=jnp.float32)
    out = jax.block_until_ready(minibatch_std_concat(x))
    ref = _reference(x)
    assert out.shape == (N, C + 1, H, W), out.shape
    assert jnp.allclose(out, ref, atol=1e-5, rtol=1e-5), "mismatch vs reference"

    # Second small shape exercising the multi-chunk / gridded path.
    key2 = jax.random.PRNGKey(1)
    N2, C2, H2, W2 = 4, 8, 64, 64                     # HW = 4096
    x2 = jax.random.normal(key2, (N2, C2, H2, W2), dtype=jnp.float32)
    out2 = jax.block_until_ready(minibatch_std_concat(x2))
    ref2 = _reference(x2)
    assert out2.shape == (N2, C2 + 1, H2, W2), out2.shape
    assert jnp.allclose(out2, ref2, atol=1e-5, rtol=1e-5), "mismatch (gridded)"

    # Third shape with HW not a multiple of 128 -> exercises the padding path.
    key3 = jax.random.PRNGKey(2)
    N3, C3, H3, W3 = 2, 4, 10, 10                     # HW = 100 -> padded 128
    x3 = jax.random.normal(key3, (N3, C3, H3, W3), dtype=jnp.float32)
    out3 = jax.block_until_ready(minibatch_std_concat(x3))
    ref3 = _reference(x3)
    assert out3.shape == (N3, C3 + 1, H3, W3), out3.shape
    assert jnp.allclose(out3, ref3, atol=1e-5, rtol=1e-5), "mismatch (padded)"

    print("KERNEL_OK")
</pallas_src>

<mosaic_0001>
module attributes {stable_mosaic.version = 11 : i64} {
  func.func @_minibatch_std_concat_kernel(%arg0: i32, %arg1: memref<2x4x128xf32, #tpu.memory_space<vmem>>, %arg2: memref<2x5x128xf32, #tpu.memory_space<vmem>>) attributes {dimension_semantics = [#tpu.dimension_semantics<parallel>], iteration_bounds = array<i64: 2>, scalar_prefetch = 0 : i64, scratch_operands = 0 : i64, tpu.core_type = #tpu.core_type<tc>, window_params = [{transform_indices = @transform_0, window_bounds = array<i64: 2, 4, 128>}, {transform_indices = @transform_1, window_bounds = array<i64: 2, 5, 128>}]} {
    %cst = arith.constant 5.000000e-01 : f32
    %c0_i32 = arith.constant 0 : i32
    %c1_i32 = arith.constant 1 : i32
    %0 = arith.muli %c0_i32, %c1_i32 : i32
    %c0_i32_0 = arith.constant 0 : i32
    %1 = arith.addi %c0_i32_0, %0 : i32
    %c128_i32 = arith.constant 128 : i32
    %2 = arith.muli %1, %c128_i32 : i32
    %3 = tpu.assume_multiple %2, 128 : i32
    %cst_1 = arith.constant 0.000000e+00 : f32
    %4 = vector.broadcast %cst_1 : f32 to vector<4x128xf32>
    %c0_i32_2 = arith.constant 0 : i32
    %5 = arith.index_cast %c0_i32_2 : i32 to index
    %c0 = arith.constant 0 : index
    %6 = arith.index_cast %3 : i32 to index
    %7 = vector.load %arg1[%5, %c0, %6] : memref<2x4x128xf32, #tpu.memory_space<vmem>>, vector<1x4x128xf32>
    %8 = vector.shape_cast %7 : vector<1x4x128xf32> to vector<4x128xf32>
    %9 = arith.index_cast %c0_i32_2 : i32 to index
    %c0_3 = arith.constant 0 : index
    %10 = arith.index_cast %3 : i32 to index
    %11 = vector.load %arg2[%9, %c0_3, %10] : memref<2x5x128xf32, #tpu.memory_space<vmem>>, vector<1x4x128xf32>
    %12 = vector.shape_cast %11 : vector<1x4x128xf32> to vector<4x128xf32>
    %13 = vector.shape_cast %8 : vector<4x128xf32> to vector<1x4x128xf32>
    tpu.vector_store %arg2[%9, %c0_3, %10], %13 {strides = array<i32>} : memref<2x5x128xf32, #tpu.memory_space<vmem>>, vector<1x4x128xf32>,
    %14 = arith.addf %4, %8 : vector<4x128xf32>
    %c1_i32_4 = arith.constant 1 : i32
    %15 = arith.index_cast %c1_i32_4 : i32 to index
    %c0_5 = arith.constant 0 : index
    %16 = arith.index_cast %3 : i32 to index
    %17 = vector.load %arg1[%15, %c0_5, %16] : memref<2x4x128xf32, #tpu.memory_space<vmem>>, vector<1x4x128xf32>
    %18 = vector.shape_cast %17 : vector<1x4x128xf32> to vector<4x128xf32>
    %19 = arith.index_cast %c1_i32_4 : i32 to index
    %c0_6 = arith.constant 0 : index
    %20 = arith.index_cast %3 : i32 to index
    %21 = vector.load %arg2[%19, %c0_6, %20] : memref<2x5x128xf32, #tpu.memory_space<vmem>>, vector<1x4x128xf32>
    %22 = vector.shape_cast %21 : vector<1x4x128xf32> to vector<4x128xf32>
    %23 = vector.shape_cast %18 : vector<4x128xf32> to vector<1x4x128xf32>
    tpu.vector_store %arg2[%19, %c0_6, %20], %23 {strides = array<i32>} : memref<2x5x128xf32, #tpu.memory_space<vmem>>, vector<1x4x128xf32>,
    %24 = arith.addf %14, %18 : vector<4x128xf32>
    %c2_i32 = arith.constant 2 : i32
    %25 = vector.broadcast %cst : f32 to vector<4x128xf32>
    %26 = arith.mulf %24, %25 : vector<4x128xf32>
    %cst_7 = arith.constant 0.000000e+00 : f32
    %27 = vector.broadcast %cst_7 : f32 to vector<4x128xf32>
    %c0_i32_8 = arith.constant 0 : i32
    %28 = arith.index_cast %c0_i32_8 : i32 to index
    %c0_9 = arith.constant 0 : index
    %29 = arith.index_cast %3 : i32 to index
    %30 = vector.load %arg1[%28, %c0_9, %29] : memref<2x4x128xf32, #tpu.memory_space<vmem>>, vector<1x4x128xf32>
    %31 = vector.shape_cast %30 : vector<1x4x128xf32> to vector<4x128xf32>
    %32 = arith.subf %31, %26 : vector<4x128xf32>
    %33 = arith.mulf %32, %32 : vector<4x128xf32>
    %34 = arith.addf %27, %33 : vector<4x128xf32>
    %c1_i32_10 = arith.constant 1 : i32
    %35 = arith.index_cast %c1_i32_10 : i32 to index
    %c0_11 = arith.constant 0 : index
    %36 = arith.index_cast %3 : i32 to index
    %37 = vector.load %arg1[%35, %c0_11, %36] : memref<2x4x128xf32, #tpu.memory_space<vmem>>, vector<1x4x128xf32>
    %38 = vector.shape_cast %37 : vector<1x4x128xf32> to vector<4x128xf32>
    %39 = arith.subf %38, %26 : vector<4x128xf32>
    %40 = arith.mulf %39, %39 : vector<4x128xf32>
    %41 = arith.addf %34, %40 : vector<4x128xf32>
    %c2_i32_12 = arith.constant 2 : i32
    %42 = vector.broadcast %cst : f32 to vector<4x128xf32>
    %43 = arith.mulf %41, %42 : vector<4x128xf32>
    %cst_13 = arith.constant 9.99999993E-9 : f32
    %44 = vector.broadcast %cst_13 : f32 to vector<4x128xf32>
    %45 = arith.addf %43, %44 : vector<4x128xf32>
    %46 = math.sqrt %45 : vector<4x128xf32>
    %cst_14 = arith.constant dense<0.000000e+00> : vector<128xf32>
    %47 = vector.multi_reduction <add>, %46, %cst_14 [0] : vector<4x128xf32> to vector<128xf32>
    %48 = vector.shape_cast %47 : vector<128xf32> to vector<1x128xf32>
    %cst_15 = arith.constant 4.000000e+00 : f32
    %49 = vector.broadcast %cst_15 : f32 to vector<1x128xf32>
    %50 = arith.divf %48, %49 : vector<1x128xf32>
    %51 = vector.shape_cast %50 : vector<1x128xf32> to vector<1x1x128xf32>
    %52 = vector.shape_cast %51 : vector<1x1x128xf32> to vector<1x1x128xf32>
    %53 = vector.broadcast %52 : vector<1x1x128xf32> to vector<2x1x128xf32>
    %c0_16 = arith.constant 0 : index
    %c4 = arith.constant 4 : index
    %54 = arith.index_cast %3 : i32 to index
    %55 = vector.load %arg2[%c0_16, %c4, %54] : memref<2x5x128xf32, #tpu.memory_space<vmem>>, vector<2x1x128xf32>
    tpu.vector_store %arg2[%c0_16, %c4, %54], %53 {strides = array<i32>} : memref<2x5x128xf32, #tpu.memory_space<vmem>>, vector<2x1x128xf32>,
    %c1_i32_17 = arith.constant 1 : i32
    return
  }
  func.func @transform_0(%arg0: i32) -> (i32, i32, i32) {
    %c0_i32 = arith.constant 0 : i32
    %c0_i32_0 = arith.constant 0 : i32
    %c0_i32_1 = arith.constant 0 : i32
    return %c0_i32, %c0_i32_0, %arg0 : i32, i32, i32
  }
  func.func @transform_1(%arg0: i32) -> (i32, i32, i32) {
    %c0_i32 = arith.constant 0 : i32
    %c0_i32_0 = arith.constant 0 : i32
    %c0_i32_1 = arith.constant 0 : i32
    return %c0_i32, %c0_i32_0, %arg0 : i32, i32, i32
  }
}

</mosaic_0001>

<bundles_post_ra>
// kernel: tpu_custom_call.1
= control target key start
LH: loop header
LB: loop body
LE: loop exit
PB: predicated region body
PF: predicated region fallthrough
CT: control target
= control target key end

     0   :  { %6 = vsyncpa [#allocation3], 0  ;;  %s544_s0 = inlined_call_operand.hbm [shape: f32[2,4,256], index: 0, kind: input, shape index: {}]   ;;  %s545_s1 = inlined_call_operand.vmem [shape: f32[2,5,256], index: 1, kind: output, shape index: {}]  }
   0x1   :  { %8 = vsyncpa [#allocation3 + $0x1], 0  ;;  %s418_s6 = smov 0   ;;  %s420_s7 = smov 0  }
   0x2   :  { %s422_s8 = smov 0   ;;  %s424_s9 = smov 0  }
   0x3 LB: > { %s437_s10 = sadd.s32 4294967295, %s402_s9   ;;  %s440_s11 = sadd.s32 1, %s402_s9   ;;  %s402_s9 = sphi %s424_s9, %s554_s9   ;;  %s398_s8 = sphi %s422_s8, %s553_s8   ;;  %s394_s7 = sphi %s420_s7, %s552_s7   ;;  %s390_s6 = sphi %s418_s6, %s551_s6  }
   0x4   : > { %s18_s12 = ssub.s32 %s402_s9, %s440_s11  ;;  %s21_s13 = sadd.s32 1, %s398_s8 }
   0x5   : > { %p19_p0 = scmp.eq.s32.totalorder %s18_s12, 0  ;;  %p28_p1 = scmp.ne.s32.totalorder %s398_s8, %s394_s7 }
   0x6   : > { %p29_p2 = scmp.eq.s32.totalorder %s402_s9, 0  ;;  %p34_p3 = scmp.ne.s32.totalorder %s394_s7, %s390_s6 }
   0x7   : > { %s450_s14 = scalar_select %p19_p0, %s398_s8, %s21_s13  }
   0x8   : > { %p452_p4 = por %p29_p2, %p28_p1  ;;  %p35_p5 = scmp.eq.s32.totalorder %s437_s10, 0 }
   0x9   : > { %p58_p6 = scmp.eq.s32.totalorder %s437_s10, 1  ;;  %p300_p8 = scmp.lt.s32.totalorder %s402_s9, 2 }
   0xa   : > { %p458_p7 = por %p35_p5, %p34_p3  ;;  %s84_s18 = sand.u32 1, %s398_s8  }
   0xb   : > { %p463_p9 = por %p58_p6, %p28_p1  ;;  %s282_s19 = sshll.u32 %s84_s18, 3 }
   0xc   : > { %s283_s20 = sshll.u32 %s402_s9, 6  ;;  %s88_s24 = scalar_lea.vmem [#allocation2], %s282_s19 }
   0xd   : > { %s548_s17 = scalar_select %p463_p9, 1, 0 }
   0xe   : > { %s472_s23 = scalar_lea.hbm %s544_s0, %s283_s20  ;;  %s94_s25 = sshll.u32 %s88_s24, 4  ;;  %s474_s25 = int_to_ptr.vmem [resolvable:$true] %s94_s25 }
   0xf   : > { %p478_p10 = pnand %p300_p8, %p452_p4  ;;  %s482_s27 = scalar_lea.sflag [#allocation3], %s84_s18 }
  0x10   : > { %s338_s28 = scalar_lea.hbm %s472_s23, 128  ;;  %s343_s2 = scalar_lea.hbm %s544_s0, 256 }
  0x11   : > { %p339_p11 = scmp.ne.s32.totalorder %s472_s23, %s338_s28  ;;  %p340_p12 = pneg %p478_p10 }
  0x12   : > { %p344_p1 = scmp.lt.u32.totalorder %s472_s23, %s544_s0  ;;  %p345_p2 = scmp.lt.u32.totalorder %s343_s2, %s338_s28 }
  0x13   : > { %p341_p13 = pnand %p340_p12, %p339_p11  ;;  %p347_p4 = scmp.lt.u32.totalorder %s338_s28, %s472_s23 }
  0x14   : > { %p346_p3 = por %p345_p2, %p344_p1 }
  0x15   : > { %p342_p0 = pneg %p341_p13 }
  0x16   : > { %p348_p5 = por %p347_p4, %p346_p3 }
  0x18   : > { %p349_p6 = pnand %p348_p5, %p342_p0 }
  0x1a   : > { %352 = shalt.err (!%p349_p6)
}
  0x1b   : > { %s353_s5 = scalar_lea.vmem %s474_s25, 128  ;;  %s404_s6 = smov [#allocation2]  }
  0x1c   : > { %p354_p8 = scmp.ne.s32.totalorder %s474_s25, %s353_s5  ;;  %s358_s12 = sshll.u32 %s404_s6, 4  ;;  %s359_s12 = int_to_ptr.vmem [resolvable:$false] %s358_s12 }
  0x1d   : > { %s360_s13 = scalar_lea.vmem %s359_s12, 256  ;;  %p361_p9 = scmp.lt.s32.totalorder %s474_s25, %s359_s12 }
  0x1e   : > { %p356_p11 = pnand %p354_p8, %p340_p12  ;;  %p362_p1 = scmp.lt.s32.totalorder %s360_s13, %s353_s5 }
  0x20   : > { %p357_p13 = pneg %p356_p11  ;;  %p363_p2 = por %p362_p1, %p361_p9 }
  0x22   : > { %p364_p3 = pnand %p363_p2, %p357_p13 }
  0x24   : > { %367 = shalt.err (!%p364_p3)
}
  0x25   : > { %s405_s15 = smov 128   ;;  %s406_s18 = smov 64  }
  0x26   : > { %s407_s19 = smov 4   ;;  %p284_p12 = scmp.ge.s32.totalorder %s402_s9, 1 }
  0x27   : > { %299 = dma.hbm_to_vmem [thread:$0]  (!%p478_p10), %s472_s23, 128, %s474_s25, %s482_s27, %s405_s15, %s406_s18, %s407_s19  }
  0x28   : > { %p102_p0 = scmp.lt.s32.totalorder %s402_s9, 3 }
  0x2a   : > { %p103_p4 = pnand %p284_p12, %p102_p0 }
  0x2b   : > { %s108_s20 = sand.u32 (!%p103_p4), 1, %s394_s7  }
  0x2c   : > { %106 = sbr.rel (%p103_p4) target bundleno = 106 (0x6a), region = 24  ;;  %s285_s21 = sshll.u32 (!%p103_p4), %s108_s20, 3 }
  0x2d   : > { %s109_s22 = scalar_lea.sflag (!%p103_p4), [#allocation3], %s108_s20  ;;  %s112_s24 = scalar_lea.vmem (!%p103_p4), [#allocation2], %s285_s21 }
  0x33   : > { %385 = dma.done.wait (%p458_p7), %s109_s22, 128  }
  0x34   : > { %387 = vsyncadd (%p458_p7), %s109_s22, 4294967168  ;;  %s286_s28 = sshll.u32 %s108_s20, 4  ;;  %v130_v0 = vld [vmem:[%s112_s24] sm:$0xf]  ;;  %v287_v1 = vld [vmem:[%s112_s24 + $0x4] sm:$0xf] }
  0x35   : > { %s517_s26 = scalar_lea.vmem [#allocation4], %s286_s28  ;;  %v139_v2 = vadd.f32 %v287_v1, %v130_v0  ;;  %v141_v3 = vld [vmem:[%s112_s24] sm:$0xf]  ;;  %v289_v4 = vld [vmem:[%s112_s24 + $0x4] sm:$0xf]  ;;  %vm158_vm2 = vcmask 1043456  }
  0x36   : > { %131 = vst [vmem:[%s517_s26] sm:$0xf] %v130_v0  ;;  %288 = vst [vmem:[%s517_s26 + $0x8] sm:$0xf] %v287_v1  ;;  %p550_p7 = scmp.ne.s32.totalorder %s548_s17, 0 }
  0x37   : > { %v140_v5 = vmul.f32 0.5, %v139_v2  ;;  %s291_s9 = sshll.u32 (%p550_p7), %s437_s10, 3 }
  0x38   : > { %s178_s25 = scalar_lea.vmem (%p550_p7), %s545_s1, %s291_s9 }
  0x39   : > { %v142_v6 = vsub.f32 %v141_v3, %v140_v5  ;;  %v146_v7 = vsub.f32 %v289_v4, %v140_v5 }
  0x3b   : > { %v143_v8 = vmul.f32 %v142_v6, %v142_v6  ;;  %v147_v9 = vmul.f32 %v146_v7, %v146_v7 }
  0x3d   : > { %v148_v10 = vadd.f32 %v147_v9, %v143_v8 }
  0x3f   : > { %v149_v11 = vmul.f32 0.5, %v148_v10 }
  0x41   : > { %v150_v12 = vadd.f32 1e-08, %v149_v11 }
  0x43   : > { %336 = vrsqrt.f32 %v150_v12  ;;  %vm153_vm0 = vcmp.eq.f32.partialorder %v150_v12, inf  ;;  %v156_v14 = vand.u32 2147483648, %v150_v12  ;;  %vm155_vm1 = vcmp.eq.f32.partialorder %v150_v12, 0.0 }
  0x4d   : > { %v337_v13 = vpop.eup %336 }
  0x4e   : > { %v152_v15 = vmul.f32 %v337_v13, %v150_v12 }
  0x50   : > { %v154_v16 = vsel %vm153_vm0, %v150_v12, %v152_v15 }
  0x51   : > { %v157_v17 = vsel %vm155_vm1, %v156_v14, %v154_v16 }
  0x52   : > { %v159_v18 = vsel %vm158_vm2, %v157_v17, 0.0 }
  0x53   : > { %v160_v19 = vrot.slane %v159_v18, 4 }
  0x55   : > { %v161_v20 = vadd.f32 %v160_v19, %v159_v18 }
  0x57   : > { %v162_v21 = vrot.slane %v161_v20, 2 }
  0x59   : > { %v163_v22 = vadd.f32 %v162_v21, %v161_v20 }
  0x5b   : > { %v164_v23 = vrot.slane %v163_v22, 1  ;;  %176 = sbr.rel (!%p550_p7) target bundleno = 106 (0x6a), region = 32 }
  0x5d   : > { %v165_v24 = vadd.f32 %v164_v23, %v163_v22 }
  0x5f   : > { %v167_v25 = vmul.f32 0.25, %v165_v24 }
  0x61   : > { %168 = vst [vmem:[%s517_s26 + $0x4] sm:$0x1] %v167_v25  ;;  %169 = vst [vmem:[%s517_s26 + $0xc] sm:$0x1] %v167_v25 }
  0x68   : > { %v208_v26 = vld [vmem:[%s517_s26] sm:$0xff]  ;;  %v210_v27 = vld [vmem:[%s517_s26 + $0x8] sm:$0xff] }
  0x69   : > { %209 = vst [vmem:[%s178_s25] sm:$0xff] %v208_v26  ;;  %211 = vst [vmem:[%s178_s25 + $0x10] sm:$0xff] %v210_v27 }
  0x6a PF: > { %p11_p9 = scmp.ge.s32.totalorder %s440_s11, 4   ;;  %s551_s6 = smov %s394_s7 }
  0x6b   : > { %s552_s7 = smov %s398_s8  ;;  %s553_s8 = smov %s450_s14 }
  0x6c   : > { %s554_s9 = smov %s440_s11  ;;  %13 = sbr.rel (!%p11_p9) target bundleno = 3 (0x3), region = 104 }
  0x73   :  { %227 = vsyncpa [#allocation3], 1 }
  0x74   :  { %229 = vsyncpa [#allocation3 + $0x1], 1 }

</bundles_post_ra>
